<compile_context>
chip_gen: v7x
topology: tpu7x:2x2x1
jax: 0.10.0
libtpu: 0.0.40
codegen_flags: <defaults>
</compile_context>

<pallas_src>
import functools

import jax
import jax.numpy as jnp
import numpy as np
from jax import lax
from jax.experimental import pallas as pl
from jax.experimental.pallas import tpu as pltpu


# ----------------------------------------------------------------------------
# In-kernel helpers.  Activations are (C, S) with S = H*W on the lane dim.
# ----------------------------------------------------------------------------

def _fill_pad(pad_ref, x, W):
    """Write activation x (cin, S) into the bf16 flat zero-padded scratch.

    pad_ref: (cin, S + 2W + 2) bf16.  Only the halo columns are zeroed (the data
    region is fully overwritten); zeroing happens every step so the kernel stays
    correct under a 'parallel' grid (per-core scratch)."""
    cin, S = x.shape
    base = W + 1
    pad_ref[:, 0:base] = jnp.zeros((cin, base), jnp.bfloat16)
    pad_ref[:, base + S:base + S + base] = jnp.zeros((cin, base), jnp.bfloat16)
    pad_ref[:, base:base + S] = x.astype(jnp.bfloat16)


def _conv3x3_acc(pad_ref, w_ref, b_ref, edge, H, W):
    """3x3 'same' conv as 9 tap-accumulated bf16 matmuls (no im2col scratch).

    pad_ref: (cin, S+2W+2) bf16 flat zero-padded activation (data at [W+1, W+1+S))
    w_ref:   (9, cout, cin) bf16 per-tap weights, tap index t = dy*3 + dx
    b_ref:   (cout, 1) f32 bias
    edge:    (2, S) f32; row 0 kills the left-border wrap, row 1 the right one
    returns  (cout, S) f32
    """
    S = H * W
    base = W + 1
    acc = None
    for dx in range(3):
        part = None
        for dy in range(3):
            off = (dy - 1) * W + (dx - 1)
            tap = pad_ref[:, base + off:base + off + S]               # bf16 (cin, S)
            m = jnp.dot(w_ref[dy * 3 + dx], tap,
                        preferred_element_type=jnp.float32)           # (cout, S) f32
            part = m if part is None else part + m
        if dx == 0:
            part = part * edge[0:1, :]
        elif dx == 2:
            part = part * edge[1:2, :]
        acc = part if acc is None else acc + part
    return acc + b_ref[...]


def _group_norm(h, g_ref, b_ref, groups, eps):
    """GroupNorm on (C, S) via segment sums (no (C,C) matmul). Two-pass variance."""
    C, S = h.shape
    cg = C // groups
    inv = 1.0 / float(cg * S)

    def gsum(v):
        s1 = jnp.sum(v, axis=1, keepdims=True)                        # (C, 1)
        sg = jnp.sum(s1.reshape(groups, cg, 1), axis=1, keepdims=True)
        return jnp.broadcast_to(sg, (groups, cg, 1)).reshape(C, 1)

    mean = gsum(h) * inv
    d = h - mean
    var = gsum(d * d) * inv
    return d * lax.rsqrt(var + eps) * g_ref[...] + b_ref[...]


def _silu(y):
    return y * jax.nn.sigmoid(y)


# ----------------------------------------------------------------------------
# Kernels
# ----------------------------------------------------------------------------

def _conv_kernel(x_ref, w_ref, b_ref, edge_ref, o_ref, pad_ref, *, H, W):
    _fill_pad(pad_ref, x_ref[0], W)
    y = _conv3x3_acc(pad_ref, w_ref, b_ref, edge_ref[...], H, W)
    o_ref[0] = y.astype(o_ref.dtype)


def _pool_conv_kernel(x_ref, ph_ref, w_ref, b_ref, edge_ref, o_ref, pad_ref,
                      *, Ho, Wo, k):
    # x_ref: (1, cin, H, W).  AvgPool2d(k) = tiny horizontal matmul with Ph
    # (W, Wo, includes 1/k^2) + unrolled vertical row sums written straight into
    # the flat conv pad scratch; then the 3x3 conv on the pooled image.
    cin, H, W = x_ref.shape[1], x_ref.shape[2], x_ref.shape[3]
    So = Ho * Wo
    base = Wo + 1
    x2 = x_ref[0].reshape(cin * H, W).astype(jnp.bfloat16)
    xh = jnp.dot(x2, ph_ref[...], preferred_element_type=jnp.float32)   # (cin*H, Wo)
    xh = xh.reshape(cin, H, Wo)
    pad_ref[:, 0:base] = jnp.zeros((cin, base), jnp.bfloat16)
    pad_ref[:, base + So:base + So + base] = jnp.zeros((cin, base), jnp.bfloat16)
    for yo in range(Ho):
        row = xh[:, yo * k, :]
        for i in range(1, k):
            row = row + xh[:, yo * k + i, :]
        pad_ref[:, base + yo * Wo:base + (yo + 1) * Wo] = row.astype(jnp.bfloat16)
    y = _conv3x3_acc(pad_ref, w_ref, b_ref, edge_ref[...], Ho, Wo)
    o_ref[0] = y.astype(o_ref.dtype)


def _gn_conv_kernel(x_ref, g_ref, be_ref, w_ref, b_ref, edge_ref, o_ref, pad_ref,
                    *, H, W, groups, eps):
    # post_enc: GroupNorm -> SiLU -> WSConv3x3, fused.
    x = x_ref[0].astype(jnp.float32)
    h = _silu(_group_norm(x, g_ref, be_ref, groups, eps))
    _fill_pad(pad_ref, h, W)
    y = _conv3x3_acc(pad_ref, w_ref, b_ref, edge_ref[...], H, W)
    o_ref[0] = y.astype(o_ref.dtype)


def _resblock_kernel(x_ref, w1_ref, b1_ref, g1_ref, be1_ref,
                     w2_ref, b2_ref, g2_ref, be2_ref, edge_ref,
                     o_ref, pad_ref, *, H, W, groups, eps):
    # Whole ResnetBlock in one kernel; intermediates never leave VMEM.
    x = x_ref[0].astype(jnp.float32)
    edge = edge_ref[...]
    _fill_pad(pad_ref, x, W)
    h = _conv3x3_acc(pad_ref, w1_ref, b1_ref, edge, H, W)
    h = _silu(_group_norm(h, g1_ref, be1_ref, groups, eps))
    _fill_pad(pad_ref, h, W)
    h = _conv3x3_acc(pad_ref, w2_ref, b2_ref, edge, H, W)
    h = _silu(_group_norm(h, g2_ref, be2_ref, groups, eps))
    o_ref[0] = (h + x).astype(o_ref.dtype)     # identity residual (dim_in == dim_out)


def _attn_kernel(x_ref, gpre_ref, wqkv_ref, wout_ref, bout_ref, gout_ref, o_ref,
                 *, heads, dim_head):
    # Residual(PreNorm(LinearAttention)) fused; heads batched; k pre-transposed so
    # both einsums are in canonical orientation (no per-einsum XLU transposes).
    C, n = x_ref.shape[1], x_ref.shape[2]
    hd = heads * dim_head
    eps = 1e-5
    x = x_ref[0].astype(jnp.float32)                                     # (C, n)
    mu = jnp.mean(x, axis=0, keepdims=True)
    d = x - mu
    var = jnp.mean(d * d, axis=0, keepdims=True)
    xn = d * lax.rsqrt(var + eps) * gpre_ref[...]
    qkv = jnp.dot(wqkv_ref[...], xn.astype(jnp.bfloat16),
                  preferred_element_type=jnp.float32)                    # (3*hd, n)
    q = qkv[0:hd].reshape(heads, dim_head, n)
    k = qkv[hd:2 * hd].reshape(heads, dim_head, n)
    v = qkv[2 * hd:3 * hd].reshape(heads, dim_head, n)
    q = jnp.exp(q - jnp.max(q, axis=1, keepdims=True))
    q = q / jnp.sum(q, axis=1, keepdims=True) * (dim_head ** -0.5)
    k = jnp.exp(k - jnp.max(k, axis=2, keepdims=True))
    k = k / jnp.sum(k, axis=2, keepdims=True)
    v = v * (1.0 / n)
    kt = jnp.swapaxes(k, 1, 2)                                           # (h, n, d)
    ctx = jnp.einsum('hen,hnd->hed', v, kt, preferred_element_type=jnp.float32)
    out = jnp.einsum('hed,hdn->hen', ctx, q, preferred_element_type=jnp.float32)
    out = out.reshape(hd, n)
    y = jnp.dot(wout_ref[...], out.astype(jnp.bfloat16),
                preferred_element_type=jnp.float32) + bout_ref[...]      # (C, n)
    mu2 = jnp.mean(y, axis=0, keepdims=True)
    d2 = y - mu2
    var2 = jnp.mean(d2 * d2, axis=0, keepdims=True)
    yn = d2 * lax.rsqrt(var2 + eps) * gout_ref[...]
    o_ref[0] = (x + yn).astype(o_ref.dtype)


# ----------------------------------------------------------------------------
# Wrapper-side constants / weight transforms (tiny, constant-folded under jit)
# ----------------------------------------------------------------------------

def _nbytes(shape, dtype):
    return int(np.prod(shape)) * jnp.dtype(dtype).itemsize


def _cparams(block_bytes, scratch_bytes):
    # Explicit scoped-VMEM request: 2x (double-buffered) blocks + scratch + slack.
    need = 2 * block_bytes + scratch_bytes + (1 << 20)
    limit = int(min(64 << 20, max(4 << 20, need)))
    return pltpu.CompilerParams(dimension_semantics=("parallel",),
                                vmem_limit_bytes=limit)


def _ws(w, eps=1e-5):
    """Weight standardization of a (3, 3, cin, cout) filter per output channel."""
    mean = jnp.mean(w, axis=(0, 1, 2), keepdims=True)
    var = jnp.var(w, axis=(0, 1, 2), keepdims=True)
    return (w - mean) * lax.rsqrt(var + eps)


def _wtaps(w):
    """(3, 3, cin, cout) filter -> (9, cout, cin) bf16 per-tap weights."""
    _, _, cin, cout = w.shape
    wt = jnp.transpose(w, (0, 1, 3, 2))                      # (3, 3, cout, cin)
    return wt.reshape(9, cout, cin).astype(jnp.bfloat16)


def _edge_mask(H, W):
    xpos = jnp.arange(H * W, dtype=jnp.int32) % W
    left = (xpos != 0).astype(jnp.float32)
    right = (xpos != W - 1).astype(jnp.float32)
    return jnp.stack([left, right], axis=0)                  # (2, S)


def _pool_h_mat(W, k):
    """(W, W//k) horizontal average-pooling matrix; carries the full 1/k^2."""
    Wo = W // k
    m = (jnp.arange(W)[:, None] // k == jnp.arange(Wo)[None, :]).astype(jnp.float32)
    return (m / float(k * k)).astype(jnp.bfloat16)


def _col(v):
    return v.reshape(-1, 1).astype(jnp.float32)


# ----------------------------------------------------------------------------
# pallas_call wrappers
# ----------------------------------------------------------------------------

def conv3x3(x, w, b, H, W, out_dtype=None):
    """x: (N, cin, H*W) -> (N, cout, H*W); 3x3 'same' conv."""
    N, cin, S = x.shape
    cout = w.shape[-1]
    out_dtype = x.dtype if out_dtype is None else out_dtype
    pad_w = S + 2 * W + 2
    blocks = (_nbytes((cin, S), x.dtype) + _nbytes((cout, S), out_dtype)
              + _nbytes((9, cout, cin), jnp.bfloat16) + _nbytes((2, S), jnp.float32))
    kern = functools.partial(_conv_kernel, H=H, W=W)
    return pl.pallas_call(
        kern,
        out_shape=jax.ShapeDtypeStruct((N, cout, S), out_dtype),
        grid=(N,),
        in_specs=[
            pl.BlockSpec((1, cin, S), lambda n: (n, 0, 0)),
            pl.BlockSpec((9, cout, cin), lambda n: (0, 0, 0)),
            pl.BlockSpec((cout, 1), lambda n: (0, 0)),
            pl.BlockSpec((2, S), lambda n: (0, 0)),
        ],
        out_specs=pl.BlockSpec((1, cout, S), lambda n: (n, 0, 0)),
        scratch_shapes=[pltpu.VMEM((cin, pad_w), jnp.bfloat16)],
        compiler_params=_cparams(blocks, _nbytes((cin, pad_w), jnp.bfloat16)),
    )(x, _wtaps(w), _col(b), _edge_mask(H, W))


def pool_conv(x, w, b, H, W, k, out_dtype=None):
    """AvgPool2d(k) -> Conv2d(3x3, pad=1), fused into one kernel (no P matrix)."""
    N, cin, S = x.shape
    assert S == H * W and H % k == 0 and W % k == 0
    Ho, Wo = H // k, W // k
    So = Ho * Wo
    cout = w.shape[-1]
    out_dtype = x.dtype if out_dtype is None else out_dtype
    pad_w = So + 2 * Wo + 2
    x4 = x.reshape(N, cin, H, W)                              # free metadata reshape
    blocks = (_nbytes((cin, S), x.dtype) + _nbytes((cout, So), out_dtype)
              + _nbytes((W, Wo), jnp.bfloat16) + _nbytes((9, cout, cin), jnp.bfloat16)
              + _nbytes((2, So), jnp.float32))
    kern = functools.partial(_pool_conv_kernel, Ho=Ho, Wo=Wo, k=k)
    return pl.pallas_call(
        kern,
        out_shape=jax.ShapeDtypeStruct((N, cout, So), out_dtype),
        grid=(N,),
        in_specs=[
            pl.BlockSpec((1, cin, H, W), lambda n: (n, 0, 0, 0)),
            pl.BlockSpec((W, Wo), lambda n: (0, 0)),
            pl.BlockSpec((9, cout, cin), lambda n: (0, 0, 0)),
            pl.BlockSpec((cout, 1), lambda n: (0, 0)),
            pl.BlockSpec((2, So), lambda n: (0, 0)),
        ],
        out_specs=pl.BlockSpec((1, cout, So), lambda n: (n, 0, 0)),
        scratch_shapes=[pltpu.VMEM((cin, pad_w), jnp.bfloat16)],
        compiler_params=_cparams(blocks, _nbytes((cin, pad_w), jnp.bfloat16)),
    )(x4, _pool_h_mat(W, k), _wtaps(w), _col(b), _edge_mask(Ho, Wo))


def gn_silu_conv(x, g, be, w, b, H, W, groups, eps, out_dtype=None):
    """GroupNorm + SiLU + 3x3 conv fused (post_enc; conv weight already WS'd)."""
    N, cin, S = x.shape
    cout = w.shape[-1]
    out_dtype = x.dtype if out_dtype is None else out_dtype
    pad_w = S + 2 * W + 2
    blocks = (_nbytes((cin, S), x.dtype) + _nbytes((cout, S), out_dtype)
              + _nbytes((9, cout, cin), jnp.bfloat16) + _nbytes((2, S), jnp.float32)
              + 2 * _nbytes((cin, 1), jnp.float32))
    kern = functools.partial(_gn_conv_kernel, H=H, W=W, groups=groups, eps=eps)
    return pl.pallas_call(
        kern,
        out_shape=jax.ShapeDtypeStruct((N, cout, S), out_dtype),
        grid=(N,),
        in_specs=[
            pl.BlockSpec((1, cin, S), lambda n: (n, 0, 0)),
            pl.BlockSpec((cin, 1), lambda n: (0, 0)),
            pl.BlockSpec((cin, 1), lambda n: (0, 0)),
            pl.BlockSpec((9, cout, cin), lambda n: (0, 0, 0)),
            pl.BlockSpec((cout, 1), lambda n: (0, 0)),
            pl.BlockSpec((2, S), lambda n: (0, 0)),
        ],
        out_specs=pl.BlockSpec((1, cout, S), lambda n: (n, 0, 0)),
        scratch_shapes=[pltpu.VMEM((cin, pad_w), jnp.bfloat16)],
        compiler_params=_cparams(blocks, _nbytes((cin, pad_w), jnp.bfloat16)),
    )(x, _col(g), _col(be), _wtaps(w), _col(b), _edge_mask(H, W))


def resnet_block(x, p, H, W, groups, eps=1e-5, out_dtype=None):
    """Fused ResnetBlock: (WSConv3x3 -> GN -> SiLU) x 2 + identity residual."""
    N, C, S = x.shape
    out_dtype = x.dtype if out_dtype is None else out_dtype
    pad_w = S + 2 * W + 2
    blocks = (_nbytes((C, S), x.dtype) + _nbytes((C, S), out_dtype)
              + 2 * _nbytes((9, C, C), jnp.bfloat16) + _nbytes((2, S), jnp.float32)
              + 6 * _nbytes((C, 1), jnp.float32))
    kern = functools.partial(_resblock_kernel, H=H, W=W, groups=groups, eps=eps)
    return pl.pallas_call(
        kern,
        out_shape=jax.ShapeDtypeStruct((N, C, S), out_dtype),
        grid=(N,),
        in_specs=[
            pl.BlockSpec((1, C, S), lambda n: (n, 0, 0)),
            pl.BlockSpec((9, C, C), lambda n: (0, 0, 0)),
            pl.BlockSpec((C, 1), lambda n: (0, 0)),
            pl.BlockSpec((C, 1), lambda n: (0, 0)),
            pl.BlockSpec((C, 1), lambda n: (0, 0)),
            pl.BlockSpec((9, C, C), lambda n: (0, 0, 0)),
            pl.BlockSpec((C, 1), lambda n: (0, 0)),
            pl.BlockSpec((C, 1), lambda n: (0, 0)),
            pl.BlockSpec((C, 1), lambda n: (0, 0)),
            pl.BlockSpec((2, S), lambda n: (0, 0)),
        ],
        out_specs=pl.BlockSpec((1, C, S), lambda n: (n, 0, 0)),
        scratch_shapes=[pltpu.VMEM((C, pad_w), jnp.bfloat16)],
        compiler_params=_cparams(blocks, _nbytes((C, pad_w), jnp.bfloat16)),
    )(x, _wtaps(_ws(p["w1"])), _col(p["b1"]), _col(p["g1"]), _col(p["be1"]),
      _wtaps(_ws(p["w2"])), _col(p["b2"]), _col(p["g2"]), _col(p["be2"]),
      _edge_mask(H, W))


def linear_attention(x, p, heads, dim_head, out_dtype=None):
    """Fused Residual(PreNorm(LinearAttention(dim, heads, dim_head)))."""
    N, C, S = x.shape
    hd = heads * dim_head
    out_dtype = x.dtype if out_dtype is None else out_dtype
    blocks = (_nbytes((C, S), x.dtype) + _nbytes((C, S), out_dtype)
              + _nbytes((3 * hd, C), jnp.bfloat16) + _nbytes((C, hd), jnp.bfloat16)
              + 4 * _nbytes((C, 1), jnp.float32))
    kern = functools.partial(_attn_kernel, heads=heads, dim_head=dim_head)
    return pl.pallas_call(
        kern,
        out_shape=jax.ShapeDtypeStruct((N, C, S), out_dtype),
        grid=(N,),
        in_specs=[
            pl.BlockSpec((1, C, S), lambda n: (n, 0, 0)),
            pl.BlockSpec((C, 1), lambda n: (0, 0)),
            pl.BlockSpec((3 * hd, C), lambda n: (0, 0)),
            pl.BlockSpec((C, hd), lambda n: (0, 0)),
            pl.BlockSpec((C, 1), lambda n: (0, 0)),
            pl.BlockSpec((C, 1), lambda n: (0, 0)),
        ],
        out_specs=pl.BlockSpec((1, C, S), lambda n: (n, 0, 0)),
        compiler_params=_cparams(blocks, 0),
    )(x, _col(p["g_pre"]),
      jnp.transpose(p["wqkv"]).astype(jnp.bfloat16),
      jnp.transpose(p["wout"]).astype(jnp.bfloat16),
      _col(p["bout"]), _col(p["g_out"]))


# ----------------------------------------------------------------------------
# Parameter setup + forward composition (plain JAX glue)
# ----------------------------------------------------------------------------

def _conv_p(key, cin, cout, k=3, scale=0.1):
    kw, kb = jax.random.split(key)
    return {"w": jax.random.normal(kw, (k, k, cin, cout), jnp.float32) * scale,
            "b": jax.random.normal(kb, (cout,), jnp.float32) * scale}


def _resblock_p(key, dim):
    k1, k2 = jax.random.split(key)
    c1, c2 = _conv_p(k1, dim, dim), _conv_p(k2, dim, dim)
    return {"w1": c1["w"], "b1": c1["b"],
            "g1": jnp.ones((dim,), jnp.float32), "be1": jnp.zeros((dim,), jnp.float32),
            "w2": c2["w"], "b2": c2["b"],
            "g2": jnp.ones((dim,), jnp.float32), "be2": jnp.zeros((dim,), jnp.float32)}


def _attn_p(key, dim, heads, dim_head):
    hd = heads * dim_head
    k1, k2, k3 = jax.random.split(key, 3)
    return {"g_pre": jnp.ones((dim,), jnp.float32),
            "wqkv": jax.random.normal(k1, (dim, 3 * hd), jnp.float32) * 0.1,
            "wout": jax.random.normal(k2, (hd, dim), jnp.float32) * 0.1,
            "bout": jax.random.normal(k3, (dim,), jnp.float32) * 0.1,
            "g_out": jnp.ones((dim,), jnp.float32)}


def init_encoder2_params(key, *, in_planes, init_planes, plains_mults, resnet_stacks,
                         attn_heads, attn_dim, latent_dim, attention=()):
    dims = [init_planes] + [init_planes * m for m in plains_mults]
    in_out = list(zip(dims[:-1], dims[1:]))
    params = {}
    key, k = jax.random.split(key)
    params["init_conv"] = _conv_p(k, in_planes, init_planes)
    down = []
    for ind, (dim_in, dim_out) in enumerate(in_out):
        stage = {"res": [], "attn": None}
        for _ in range(resnet_stacks):
            key, k = jax.random.split(key)
            stage["res"].append(_resblock_p(k, dim_in))
        if (dim_in in attention) or (ind in attention):
            key, k = jax.random.split(key)
            stage["attn"] = _attn_p(k, dim_in, attn_heads, attn_dim)
        key, k = jax.random.split(key)
        stage["down"] = _conv_p(k, dim_in, dim_out)
        down.append(stage)
    params["down"] = down
    dim_mid = dims[-1]
    key, k1, k2, k3 = jax.random.split(key, 4)
    params["mid"] = {"rb1": _resblock_p(k1, dim_mid),
                     "attn": _attn_p(k2, dim_mid, attn_heads, attn_dim),
                     "rb2": _resblock_p(k3, dim_mid)}
    key, k = jax.random.split(key)
    params["post"] = {"gn_g": jnp.ones((dim_mid,), jnp.float32),
                      "gn_b": jnp.zeros((dim_mid,), jnp.float32),
                      "conv": _conv_p(k, dim_mid, latent_dim)}
    return params


def encoder2_forward(params, x_nchw, *, groups, pool_kern, attn_heads, attn_dim,
                     eps=1e-6, inter_dtype=jnp.bfloat16):
    N, C0, H, W = x_nchw.shape
    x = x_nchw.reshape(N, C0, H * W)                 # NCHW -> (N, C, S); free reshape
    x = conv3x3(x, params["init_conv"]["w"], params["init_conv"]["b"], H, W,
                out_dtype=inter_dtype)
    n_stages = len(params["down"])
    for ind, stage in enumerate(params["down"]):
        is_last = ind == n_stages - 1
        for rb in stage["res"]:
            x = resnet_block(x, rb, H, W, groups, out_dtype=inter_dtype)
        if stage["attn"] is not None:
            x = linear_attention(x, stage["attn"], attn_heads, attn_dim,
                                 out_dtype=inter_dtype)
        if is_last:
            # WeightStandardizedConv2d(dim_in -> dim_out, 3x3, stride 1)
            x = conv3x3(x, _ws(stage["down"]["w"]), stage["down"]["b"], H, W,
                        out_dtype=inter_dtype)
        else:
            # TODO(synk): Downsample definition not in the snippet; assumed
            # AvgPool2d(pool_kern) -> Conv2d(3x3, pad=1) (plain conv, no WS).
            x = pool_conv(x, stage["down"]["w"], stage["down"]["b"], H, W, pool_kern,
                          out_dtype=inter_dtype)
            H, W = H // pool_kern, W // pool_kern
    mid = params["mid"]
    x = resnet_block(x, mid["rb1"], H, W, groups, out_dtype=inter_dtype)
    x = linear_attention(x, mid["attn"], attn_heads, attn_dim, out_dtype=inter_dtype)
    x = resnet_block(x, mid["rb2"], H, W, groups, out_dtype=inter_dtype)
    post = params["post"]
    x = gn_silu_conv(x, post["gn_g"], post["gn_b"],
                     _ws(post["conv"]["w"]), post["conv"]["b"], H, W, groups, eps,
                     out_dtype=x_nchw.dtype)
    return x.reshape(N, x.shape[1], H, W)            # (N, C, S) -> NCHW


# ----------------------------------------------------------------------------

if __name__ == "__main__":
    # Small config consistent with Encoder2(__init__):
    #   in_planes=3, init_planes=8, plains_mults=(1, 2), resnet_grnorm_groups=4,
    #   resnet_stacks=1, downsample_mode='avg', pool_kern=2, attention=[],
    #   attn_heads=2, attn_dim=8, latent_dim=4, eps=1e-6, legacy_mid=False
    key = jax.random.PRNGKey(0)
    kp, kx, kt = jax.random.split(key, 3)
    params = init_encoder2_params(
        kp, in_planes=3, init_planes=8, plains_mults=(1, 2), resnet_stacks=1,
        attn_heads=2, attn_dim=8, latent_dim=4, attention=())
    x = jax.random.normal(kx, (2, 3, 16, 16), jnp.float32)   # NCHW, like PyTorch

    # Sanity check 1: tap-accumulated conv kernel vs lax.conv (loose tol: bf16 MXU).
    w0, b0 = params["init_conv"]["w"], params["init_conv"]["b"]
    y_pl = conv3x3(x.reshape(2, 3, 256), w0, b0, 16, 16).reshape(2, 8, 16, 16)
    y_ref = lax.conv_general_dilated(
        x, w0, window_strides=(1, 1), padding=((1, 1), (1, 1)),
        dimension_numbers=("NCHW", "HWIO", "NCHW")) + b0.reshape(1, 8, 1, 1)
    np.testing.assert_allclose(np.asarray(y_pl), np.asarray(y_ref), atol=5e-2, rtol=5e-2)

    # Sanity check 2: fused AvgPool2d(2) + conv3x3 vs pure-JAX reference.
    xt = jax.random.normal(kt, (2, 8, 16, 16), jnp.float32)
    wd, bd = params["down"][0]["down"]["w"], params["down"][0]["down"]["b"]
    yp_pl = pool_conv(xt.reshape(2, 8, 256), wd, bd, 16, 16, 2).reshape(2, 8, 8, 8)
    xp_ref = xt.reshape(2, 8, 8, 2, 8, 2).mean(axis=(3, 5))
    yp_ref = lax.conv_general_dilated(
        xp_ref, wd, window_strides=(1, 1), padding=((1, 1), (1, 1)),
        dimension_numbers=("NCHW", "HWIO", "NCHW")) + bd.reshape(1, 8, 1, 1)
    np.testing.assert_allclose(np.asarray(yp_pl), np.asarray(yp_ref), atol=5e-2, rtol=5e-2)

    fwd = jax.jit(functools.partial(encoder2_forward, groups=4, pool_kern=2,
                                    attn_heads=2, attn_dim=8, eps=1e-6))
    y = fwd(params, x)
    jax.block_until_ready(y)
    assert y.shape == (2, 4, 8, 8), y.shape
    assert bool(jnp.all(jnp.isfinite(y)))
    print("KERNEL_OK")
</pallas_src>

<mosaic_0001>
module attributes {stable_mosaic.version = 11 : i64} {
  func.func @_conv_kernel(%arg0: i32, %arg1: memref<1x3x256xf32, #tpu.memory_space<vmem>>, %arg2: memref<9x8x3xbf16, #tpu.memory_space<vmem>>, %arg3: memref<8x1xf32, #tpu.memory_space<vmem>>, %arg4: memref<2x256xf32, #tpu.memory_space<vmem>>, %arg5: memref<1x8x256xf32, #tpu.memory_space<vmem>>, %arg6: memref<3x290xbf16, #tpu.memory_space<vmem>>) attributes {dimension_semantics = [#tpu.dimension_semantics<parallel>], iteration_bounds = array<i64: 2>, scalar_prefetch = 0 : i64, scratch_operands = 1 : i64, tpu.core_type = #tpu.core_type<tc>, window_params = [{transform_indices = @transform_0, window_bounds = array<i64: 1, 3, 256>}, {pipeline_mode = #tpu.pipeline_mode<synchronous>, transform_indices = @transform_1, window_bounds = array<i64: 9, 8, 3>}, {pipeline_mode = #tpu.pipeline_mode<synchronous>, transform_indices = @transform_2, window_bounds = array<i64: 8, 1>}, {pipeline_mode = #tpu.pipeline_mode<synchronous>, transform_indices = @transform_3, window_bounds = array<i64: 2, 256>}, {transform_indices = @transform_4, window_bounds = array<i64: 1, 8, 256>}]} {
    %c0 = arith.constant 0 : index
    %c0_0 = arith.constant 0 : index
    %c0_1 = arith.constant 0 : index
    %0 = vector.load %arg1[%c0, %c0_0, %c0_1] : memref<1x3x256xf32, #tpu.memory_space<vmem>>, vector<1x3x256xf32>
    %1 = vector.shape_cast %0 : vector<1x3x256xf32> to vector<3x256xf32>
    %cst = arith.constant 0.000000e+00 : bf16
    %2 = vector.broadcast %cst : bf16 to vector<3x17xbf16>
    %c0_2 = arith.constant 0 : index
    %c0_3 = arith.constant 0 : index
    %3 = vector.load %arg6[%c0_2, %c0_3] : memref<3x290xbf16, #tpu.memory_space<vmem>>, vector<3x17xbf16>
    tpu.vector_store %arg6[%c0_2, %c0_3], %2 {strides = array<i32>} : memref<3x290xbf16, #tpu.memory_space<vmem>>, vector<3x17xbf16>,
    %cst_4 = arith.constant 0.000000e+00 : bf16
    %4 = vector.broadcast %cst_4 : bf16 to vector<3x17xbf16>
    %c0_5 = arith.constant 0 : index
    %c273 = arith.constant 273 : index
    %5 = vector.load %arg6[%c0_5, %c273] : memref<3x290xbf16, #tpu.memory_space<vmem>>, vector<3x17xbf16>
    tpu.vector_store %arg6[%c0_5, %c273], %4 {strides = array<i32>} : memref<3x290xbf16, #tpu.memory_space<vmem>>, vector<3x17xbf16>,
    %6 = arith.truncf %1 : vector<3x256xf32> to vector<3x256xbf16>
    %c0_6 = arith.constant 0 : index
    %c17 = arith.constant 17 : index
    %7 = vector.load %arg6[%c0_6, %c17] : memref<3x290xbf16, #tpu.memory_space<vmem>>, vector<3x256xbf16>
    tpu.vector_store %arg6[%c0_6, %c17], %6 {strides = array<i32>} : memref<3x290xbf16, #tpu.memory_space<vmem>>, vector<3x256xbf16>,
    %c0_7 = arith.constant 0 : index
    %c0_8 = arith.constant 0 : index
    %8 = vector.load %arg4[%c0_7, %c0_8] : memref<2x256xf32, #tpu.memory_space<vmem>>, vector<2x256xf32>
    %c0_9 = arith.constant 0 : index
    %c0_10 = arith.constant 0 : index
    %9 = vector.load %arg6[%c0_9, %c0_10] : memref<3x290xbf16, #tpu.memory_space<vmem>>, vector<3x256xbf16>
    %c0_11 = arith.constant 0 : index
    %c0_12 = arith.constant 0 : index
    %c0_13 = arith.constant 0 : index
    %10 = vector.load %arg2[%c0_11, %c0_12, %c0_13] : memref<9x8x3xbf16, #tpu.memory_space<vmem>>, vector<1x8x3xbf16>
    %11 = vector.shape_cast %10 : vector<1x8x3xbf16> to vector<8x3xbf16>
    %cst_14 = arith.constant dense<0.000000e+00> : vector<8x256xf32>
    %12 = tpu.matmul %11, %9, %cst_14 {dimension_numbers = #tpu.dot_dimension_numbers<[1], [0], [0], [1], [0, 0, 1, 1], [], []>} : vector<8x3xbf16>, vector<3x256xbf16>, vector<8x256xf32> -> vector<8x256xf32>
    %c0_15 = arith.constant 0 : index
    %c16 = arith.constant 16 : index
    %13 = vector.load %arg6[%c0_15, %c16] : memref<3x290xbf16, #tpu.memory_space<vmem>>, vector<3x256xbf16>
    %c3 = arith.constant 3 : index
    %c0_16 = arith.constant 0 : index
    %c0_17 = arith.constant 0 : index
    %14 = vector.load %arg2[%c3, %c0_16, %c0_17] : memref<9x8x3xbf16, #tpu.memory_space<vmem>>, vector<1x8x3xbf16>
    %15 = vector.shape_cast %14 : vector<1x8x3xbf16> to vector<8x3xbf16>
    %cst_18 = arith.constant dense<0.000000e+00> : vector<8x256xf32>
    %16 = tpu.matmul %15, %13, %cst_18 {dimension_numbers = #tpu.dot_dimension_numbers<[1], [0], [0], [1], [0, 0, 1, 1], [], []>} : vector<8x3xbf16>, vector<3x256xbf16>, vector<8x256xf32> -> vector<8x256xf32>
    %17 = arith.addf %12, %16 : vector<8x256xf32>
    %c0_19 = arith.constant 0 : index
    %c32 = arith.constant 32 : index
    %18 = vector.load %arg6[%c0_19, %c32] : memref<3x290xbf16, #tpu.memory_space<vmem>>, vector<3x256xbf16>
    %c6 = arith.constant 6 : index
    %c0_20 = arith.constant 0 : index
    %c0_21 = arith.constant 0 : index
    %19 = vector.load %arg2[%c6, %c0_20, %c0_21] : memref<9x8x3xbf16, #tpu.memory_space<vmem>>, vector<1x8x3xbf16>
    %20 = vector.shape_cast %19 : vector<1x8x3xbf16> to vector<8x3xbf16>
    %cst_22 = arith.constant dense<0.000000e+00> : vector<8x256xf32>
    %21 = tpu.matmul %20, %18, %cst_22 {dimension_numbers = #tpu.dot_dimension_numbers<[1], [0], [0], [1], [0, 0, 1, 1], [], []>} : vector<8x3xbf16>, vector<3x256xbf16>, vector<8x256xf32> -> vector<8x256xf32>
    %22 = arith.addf %17, %21 : vector<8x256xf32>
    %23 = vector.extract_strided_slice %8 {offsets = [0, 0], sizes = [1, 256], strides = [1, 1]} : vector<2x256xf32> to vector<1x256xf32>
    %24 = vector.broadcast %23 : vector<1x256xf32> to vector<8x256xf32>
    %25 = arith.mulf %22, %24 : vector<8x256xf32>
    %c0_23 = arith.constant 0 : index
    %c1 = arith.constant 1 : index
    %26 = vector.load %arg6[%c0_23, %c1] : memref<3x290xbf16, #tpu.memory_space<vmem>>, vector<3x256xbf16>
    %c1_24 = arith.constant 1 : index
    %c0_25 = arith.constant 0 : index
    %c0_26 = arith.constant 0 : index
    %27 = vector.load %arg2[%c1_24, %c0_25, %c0_26] : memref<9x8x3xbf16, #tpu.memory_space<vmem>>, vector<1x8x3xbf16>
    %28 = vector.shape_cast %27 : vector<1x8x3xbf16> to vector<8x3xbf16>
    %cst_27 = arith.constant dense<0.000000e+00> : vector<8x256xf32>
    %29 = tpu.matmul %28, %26, %cst_27 {dimension_numbers = #tpu.dot_dimension_numbers<[1], [0], [0], [1], [0, 0, 1, 1], [], []>} : vector<8x3xbf16>, vector<3x256xbf16>, vector<8x256xf32> -> vector<8x256xf32>
    %c0_28 = arith.constant 0 : index
    %c17_29 = arith.constant 17 : index
    %30 = vector.load %arg6[%c0_28, %c17_29] : memref<3x290xbf16, #tpu.memory_space<vmem>>, vector<3x256xbf16>
    %c4 = arith.constant 4 : index
    %c0_30 = arith.constant 0 : index
    %c0_31 = arith.constant 0 : index
    %31 = vector.load %arg2[%c4, %c0_30, %c0_31] : memref<9x8x3xbf16, #tpu.memory_space<vmem>>, vector<1x8x3xbf16>
    %32 = vector.shape_cast %31 : vector<1x8x3xbf16> to vector<8x3xbf16>
    %cst_32 = arith.constant dense<0.000000e+00> : vector<8x256xf32>
    %33 = tpu.matmul %32, %30, %cst_32 {dimension_numbers = #tpu.dot_dimension_numbers<[1], [0], [0], [1], [0, 0, 1, 1], [], []>} : vector<8x3xbf16>, vector<3x256xbf16>, vector<8x256xf32> -> vector<8x256xf32>
    %34 = arith.addf %29, %33 : vector<8x256xf32>
    %c0_33 = arith.constant 0 : index
    %c33 = arith.constant 33 : index
    %35 = vector.load %arg6[%c0_33, %c33] : memref<3x290xbf16, #tpu.memory_space<vmem>>, vector<3x256xbf16>
    %c7 = arith.constant 7 : index
    %c0_34 = arith.constant 0 : index
    %c0_35 = arith.constant 0 : index
    %36 = vector.load %arg2[%c7, %c0_34, %c0_35] : memref<9x8x3xbf16, #tpu.memory_space<vmem>>, vector<1x8x3xbf16>
    %37 = vector.shape_cast %36 : vector<1x8x3xbf16> to vector<8x3xbf16>
    %cst_36 = arith.constant dense<0.000000e+00> : vector<8x256xf32>
    %38 = tpu.matmul %37, %35, %cst_36 {dimension_numbers = #tpu.dot_dimension_numbers<[1], [0], [0], [1], [0, 0, 1, 1], [], []>} : vector<8x3xbf16>, vector<3x256xbf16>, vector<8x256xf32> -> vector<8x256xf32>
    %39 = arith.addf %34, %38 : vector<8x256xf32>
    %40 = arith.addf %25, %39 : vector<8x256xf32>
    %c0_37 = arith.constant 0 : index
    %c2 = arith.constant 2 : index
    %41 = vector.load %arg6[%c0_37, %c2] : memref<3x290xbf16, #tpu.memory_space<vmem>>, vector<3x256xbf16>
    %c2_38 = arith.constant 2 : index
    %c0_39 = arith.constant 0 : index
    %c0_40 = arith.constant 0 : index
    %42 = vector.load %arg2[%c2_38, %c0_39, %c0_40] : memref<9x8x3xbf16, #tpu.memory_space<vmem>>, vector<1x8x3xbf16>
    %43 = vector.shape_cast %42 : vector<1x8x3xbf16> to vector<8x3xbf16>
    %cst_41 = arith.constant dense<0.000000e+00> : vector<8x256xf32>
    %44 = tpu.matmul %43, %41, %cst_41 {dimension_numbers = #tpu.dot_dimension_numbers<[1], [0], [0], [1], [0, 0, 1, 1], [], []>} : vector<8x3xbf16>, vector<3x256xbf16>, vector<8x256xf32> -> vector<8x256xf32>
    %c0_42 = arith.constant 0 : index
    %c18 = arith.constant 18 : index
    %45 = vector.load %arg6[%c0_42, %c18] : memref<3x290xbf16, #tpu.memory_space<vmem>>, vector<3x256xbf16>
    %c5 = arith.constant 5 : index
    %c0_43 = arith.constant 0 : index
    %c0_44 = arith.constant 0 : index
    %46 = vector.load %arg2[%c5, %c0_43, %c0_44] : memref<9x8x3xbf16, #tpu.memory_space<vmem>>, vector<1x8x3xbf16>
    %47 = vector.shape_cast %46 : vector<1x8x3xbf16> to vector<8x3xbf16>
    %cst_45 = arith.constant dense<0.000000e+00> : vector<8x256xf32>
    %48 = tpu.matmul %47, %45, %cst_45 {dimension_numbers = #tpu.dot_dimension_numbers<[1], [0], [0], [1], [0, 0, 1, 1], [], []>} : vector<8x3xbf16>, vector<3x256xbf16>, vector<8x256xf32> -> vector<8x256xf32>
    %49 = arith.addf %44, %48 : vector<8x256xf32>
    %c0_46 = arith.constant 0 : index
    %c34 = arith.constant 34 : index
    %50 = vector.load %arg6[%c0_46, %c34] : memref<3x290xbf16, #tpu.memory_space<vmem>>, vector<3x256xbf16>
    %c8 = arith.constant 8 : index
    %c0_47 = arith.constant 0 : index
    %c0_48 = arith.constant 0 : index
    %51 = vector.load %arg2[%c8, %c0_47, %c0_48] : memref<9x8x3xbf16, #tpu.memory_space<vmem>>, vector<1x8x3xbf16>
    %52 = vector.shape_cast %51 : vector<1x8x3xbf16> to vector<8x3xbf16>
    %cst_49 = arith.constant dense<0.000000e+00> : vector<8x256xf32>
    %53 = tpu.matmul %52, %50, %cst_49 {dimension_numbers = #tpu.dot_dimension_numbers<[1], [0], [0], [1], [0, 0, 1, 1], [], []>} : vector<8x3xbf16>, vector<3x256xbf16>, vector<8x256xf32> -> vector<8x256xf32>
    %54 = arith.addf %49, %53 : vector<8x256xf32>
    %55 = vector.extract_strided_slice %8 {offsets = [1, 0], sizes = [1, 256], strides = [1, 1]} : vector<2x256xf32> to vector<1x256xf32>
    %56 = vector.broadcast %55 : vector<1x256xf32> to vector<8x256xf32>
    %57 = arith.mulf %54, %56 : vector<8x256xf32>
    %58 = arith.addf %40, %57 : vector<8x256xf32>
    %c0_50 = arith.constant 0 : index
    %c0_51 = arith.constant 0 : index
    %59 = vector.load %arg3[%c0_50, %c0_51] : memref<8x1xf32, #tpu.memory_space<vmem>>, vector<8x1xf32>
    %60 = vector.broadcast %59 : vector<8x1xf32> to vector<8x256xf32>
    %61 = arith.addf %58, %60 : vector<8x256xf32>
    %c0_52 = arith.constant 0 : index
    %c0_53 = arith.constant 0 : index
    %c0_54 = arith.constant 0 : index
    %62 = vector.load %arg5[%c0_52, %c0_53, %c0_54] : memref<1x8x256xf32, #tpu.memory_space<vmem>>, vector<1x8x256xf32>
    %63 = vector.shape_cast %62 : vector<1x8x256xf32> to vector<8x256xf32>
    %64 = vector.shape_cast %61 : vector<8x256xf32> to vector<1x8x256xf32>
    tpu.vector_store %arg5[%c0_52, %c0_53, %c0_54], %64 {strides = array<i32>} : memref<1x8x256xf32, #tpu.memory_space<vmem>>, vector<1x8x256xf32>,
    return
  }
  func.func @transform_0(%arg0: i32) -> (i32, i32, i32) {
    %c0_i32 = arith.constant 0 : i32
    %c0_i32_0 = arith.constant 0 : i32
    %c0_i32_1 = arith.constant 0 : i32
    return %arg0, %c0_i32, %c0_i32_0 : i32, i32, i32
  }
  func.func @transform_1(%arg0: i32) -> (i32, i32, i32) {
    %c0_i32 = arith.constant 0 : i32
    %c0_i32_0 = arith.constant 0 : i32
    %c0_i32_1 = arith.constant 0 : i32
    %c0_i32_2 = arith.constant 0 : i32
    return %c0_i32, %c0_i32_0, %c0_i32_1 : i32, i32, i32
  }
  func.func @transform_2(%arg0: i32) -> (i32, i32) {
    %c0_i32 = arith.constant 0 : i32
    %c0_i32_0 = arith.constant 0 : i32
    %c0_i32_1 = arith.constant 0 : i32
    return %c0_i32, %c0_i32_0 : i32, i32
  }
  func.func @transform_3(%arg0: i32) -> (i32, i32) {
    %c0_i32 = arith.constant 0 : i32
    %c0_i32_0 = arith.constant 0 : i32
    %c0_i32_1 = arith.constant 0 : i32
    return %c0_i32, %c0_i32_0 : i32, i32
  }
  func.func @transform_4(%arg0: i32) -> (i32, i32, i32) {
    %c0_i32 = arith.constant 0 : i32
    %c0_i32_0 = arith.constant 0 : i32
    %c0_i32_1 = arith.constant 0 : i32
    return %arg0, %c0_i32, %c0_i32_0 : i32, i32, i32
  }
}

</mosaic_0001>

<bundles_post_ra>
// kernel: tpu_custom_call.1
= control target key start
LH: loop header
LB: loop body
LE: loop exit
PB: predicated region body
PF: predicated region fallthrough
CT: control target
= control target key end

     0   :  { %9 = vsyncpa [#allocation4], 0  ;;  %s1452_s0 = inlined_call_operand.vmem [shape: f32[2,3,256], index: 0, kind: input, shape index: {}]   ;;  %s1453_s1 = inlined_call_operand.vmem [shape: bf16[9,8,3], index: 1, kind: input, shape index: {}]   ;;  %s1454_s2 = inlined_call_operand.vmem [shape: f32[8,1], index: 2, kind: input, shape index: {}]   ;;  %s1455_s3 = inlined_call_operand.vmem [shape: f32[2,256], index: 3, kind: input, shape index: {}]   ;;  %s1456_s4 = inlined_call_operand.hbm [shape: f32[2,8,256], index: 4, kind: output, shape index: {}]  }
   0x1   :  { %11 = vsyncpa [#allocation4 + $0x1], 0  ;;  %s1250_s15 = smov 0   ;;  %s1252_s16 = smov 0  }
   0x2   :  { %s1254_s17 = smov 0   ;;  %s1256_s18 = smov 0  }
   0x3 LB: > { %s1271_s19 = sadd.s32 4294967295, %s1210_s18   ;;  %s1041_s20 = sadd.s32 4294967294, %s1210_s18   ;;  %s1210_s18 = sphi %s1256_s18, %s1462_s18   ;;  %s1206_s17 = sphi %s1254_s17, %s1461_s17   ;;  %s1202_s16 = sphi %s1252_s16, %s1460_s16   ;;  %s1198_s15 = sphi %s1250_s15, %s1459_s15  }
   0x4   : > { %s1275_s21 = sadd.s32 1, %s1210_s18   ;;  %s113_s22 = sadd.s32 1, %s1206_s17 }
   0x5   : > { %s110_s23 = ssub.s32 %s1210_s18, %s1275_s21  ;;  %p123_p0 = scmp.ne.s32.totalorder %s1206_s17, %s1202_s16 }
   0x6   : > { %p111_p1 = scmp.eq.s32.totalorder %s110_s23, 0  ;;  %p124_p2 = scmp.eq.s32.totalorder %s1271_s19, 1 }
   0x7   : > { %p129_p3 = scmp.ne.s32.totalorder %s1202_s16, %s1198_s15  ;;  %p130_p4 = scmp.eq.s32.totalorder %s1041_s20, 1 }
   0x8   : > { %s1286_s24 = scalar_select %p111_p1, %s1206_s17, %s113_s22  }
   0x9   : > { %p1288_p5 = por %p124_p2, %p123_p0  ;;  %p1292_p6 = por %p130_p4, %p129_p3 }
   0xa   : > { %p1044_p7 = scmp.ge.s32.totalorder %s1210_s18, 1  ;;  %p165_p8 = scmp.lt.s32.totalorder %s1210_s18, 3 }
   0xc   : > { %p166_p9 = pnand %p1044_p7, %p165_p8 }
   0xd   : > { %p191_p10 = scmp.lt.s32.totalorder (!%p166_p9), %s1271_s19, 1  ;;  %v220_v0 = vlaneseq (!%p166_p9)  ;;  %vm198_vm0 = vcmask (!%p166_p9), 132096   ;;  %vm204_vm1 = vcmask (!%p166_p9), 271496   ;;  %v1212_v1 = vmov (!%p166_p9), 1983009808   ;;  %s1213_s6 = smov (!%p166_p9), 17  }
   0xe   : > { %169 = sbr.rel (%p166_p9) target bundleno = 560 (0x230), region = 36  ;;  %v218_v2 = vunpack.c.l.s4 (!%p166_p9), %v1212_v1  ;;  %vm199_vm2 = vsmask.f32 (!%p166_p9), 1280  ;;  %v201_v3 = vld [vmem:[#allocation2] sm:$0x3] (!%p166_p9)  ;;  %vm230_vm5 = vcmask (!%p166_p9), 1041544  }
   0xf   : > { %v206_v4 = vld [vmem:[#allocation2 + $0x4] sm:$0x3] (!%p166_p9)  ;;  %vm200_vm3 = vmand (!%p166_p9), %vm198_vm0, %vm199_vm2  ;;  %v1301_v6 = vshrl.u32 (!%p166_p9), %v220_v0, 7  ;;  %vm232_vm6 = vcmask (!%p166_p9), 1043458   ;;  %vm233_vm7 = vsmask.f32 (!%p166_p9), 3328 }
  0x10   : > { %v219_v5 = vunpack.c.0.s8 (!%p166_p9), %v218_v2  ;;  %v202_v7 = vsel (!%p166_p9), %vm200_vm3, 0, %v201_v3  ;;  %vm205_vm4 = vmand (!%p166_p9), %vm204_vm1, %vm199_vm2  ;;  %vm236_vm10 = vcmask (!%p166_p9), 136196   ;;  %vm237_vm11 = vsmask.f32 (!%p166_p9), 5376  ;;  %s1216_s7 = smov (!%p166_p9), 96   ;;  %s1217_s8 = smov (!%p166_p9), 112  }
  0x11   : > { %203 = vst [vmem:[#allocation2] sm:$0x3] (!%p166_p9), %v202_v7  ;;  %v207_v8 = vsel (!%p166_p9), %vm205_vm4, 0, %v206_v4  ;;  %vm231_vm8 = vmand (!%p166_p9), %vm230_vm5, %vm199_vm2  ;;  %vm227_vm14 = vcmask (!%p166_p9), 138240   ;;  %v1214_v19 = vmov (!%p166_p9), 0   ;;  %vm279_vm0 = vcmask (!%p166_p9), 1040384  }
  0x12   : > { %208 = vst [vmem:[#allocation2 + $0x4] sm:$0x3] (!%p166_p9), %v207_v8  ;;  %v1308_v11 = vsub.s32 (!%p166_p9), %v219_v5, %v1301_v6  ;;  %vm234_vm9 = vmand (!%p166_p9), %vm232_vm6, %vm233_vm7  ;;  %380 = vmatprep.mubr.bf16.mxu0 (!%p166_p9), %v1214_v19  ;;  %321 = vmatprep.mubr.bf16.mxu1 (!%p166_p9), %v1214_v19  ;;  %vm280_vm1 = vcmask (!%p166_p9), 1041408   ;;  %v1215_v20 = vmov (!%p166_p9), 65535   ;;  %s1218_s9 = smov (!%p166_p9), 110   ;;  %vm275_vm2 = vcmask (!%p166_p9), 23552  }
  0x13   : > { %vm235_vm12 = vmor (!%p166_p9), %vm234_vm9, %vm231_vm8  ;;  %1139 = vset.pattern.permute.xlu1 (!%p166_p9), %v1214_v19  ;;  %1140 = vset.pattern.permute.xlu0 (!%p166_p9), %v1214_v19  ;;  %v281_v21 = vsel (!%p166_p9), %vm279_vm0, 4294967295, %v1215_v20  ;;  %v245_v35 = vld [vmem:[%s1453_s1] sm:$0xf] (!%p166_p9)  ;;  %s1219_s12 = smov (!%p166_p9), 111   ;;  %s1220_s13 = smov (!%p166_p9), 126   ;;  %vm415_vm3 = vcmask (!%p166_p9), 785408  }
  0x14   : > { %vm238_vm13 = vmand (!%p166_p9), %vm236_vm10, %vm237_vm11  ;;  %v1318_v27 = vsel (!%p166_p9), %vm280_vm1, %v281_v21, 0  ;;  %s1221_s14 = smov (!%p166_p9), 127   ;;  %s1222_s20 = smov (!%p166_p9), 95   ;;  %v957_v58 = vld [vmem:[%s1454_s2] sm:$0xff] (!%p166_p9)  ;;  %vm272_vm4 = vcmask (!%p166_p9), 916480   ;;  %vm742_vm5 = vcmask (!%p166_p9), 900096  }
  0x15   : > { %s192_s27 = scalar_select %p191_p10, %s1271_s19, 1  ;;  %vm239_vm15 = vmor %vm238_vm13, %vm235_vm12  ;;  %v1049_v20 = vld [vmem:[%s1453_s1 + $0xc] sm:$0xf]  ;;  %vm519_vm6 = vcmask 908288   ;;  %vm801_vm7 = vcmask 1031168   ;;  %vm578_vm8 = vcmask 1039360  }
  0x16   : > { %s1223_s22 = smov 94   ;;  %vm657_vm9 = vcmask 777216   ;;  %vm880_vm10 = vcmask 769024   ;;  %s188_s29 = sand.u32 1, %s1202_s16  }
  0x17   : > { %s1072_s28 = sshll.u32 %s192_s27, 3  ;;  %s1045_s30 = sshll.u32 %s188_s29, 4 }
  0x18   : > { %s195_s5 = scalar_lea.vmem %s1452_s0, %s1072_s28  ;;  %s968_s11 = scalar_lea.sflag [#allocation4], %s188_s29 }
  0x19   : > { %v197_v9 = vld [vmem:[%s195_s5] sm:$0x77]  ;;  %s1073_s5 = sshll.u32 %s1271_s19, 8 }
  0x1a   : > { %v210_v10 = vcombine.high %v197_v9, %v197_v9  ;;  %v240_v15 = vld [vmem:[#allocation2] sm:$0x3f]  ;;  %s1408_s10 = scalar_lea.hbm %s1456_s4, %s1073_s5 }
  0x1c   : > { %v1048_v12 = vpack.c.bf16 %v210_v10, %v197_v9 }
  0x1e   : > { %v223_v13 = vrot.slane %v1048_v12, %v1308_v11  ;;  %v1053_v12 = vld [vmem:[%s1453_s1 + $0x18] sm:$0xf] }
  0x20   : > { %224 = vrot.lane.b32.xlu0 %v223_v13, %s1213_s6  ;;  %s190_s6 = scalar_lea.vmem [#allocation3], %s1045_s30 }
  0x92   : > { %v225_v14 = vpop.permute.xlu0 %224 }
  0x93   : > { %v226_v16 = vrot.slane %v225_v14, 6 }
  0x95   : > { %v228_v17 = vsel %vm227_vm14, %v226_v16, %v225_v14 }
  0x96   : > { %v241_v18 = vsel %vm239_vm15, %v228_v17, %v240_v15 }
  0x97   : > { %242 = vst [vmem:[#allocation2] sm:$0x3f] %v241_v18 }
  0x9e   : > { %v389_v22 = vld [vmem:[#allocation2] sm:$0x3f] }
  0x9f   : > { %v246_v23 = vld [vmem:[#allocation2] sm:$0x3f]  ;;  %v400_v24 = vrot.slane %v389_v22, %v1308_v11  ;;  %v393_v36 = vcombine.high %v389_v22, %v389_v22 }
  0xa0   : > { %v257_v25 = vrot.slane %v246_v23, %v1308_v11  ;;  %v1051_v26 = vld.sshfl [vmem:[#allocation2] sm:$0x33 pattern:$0x76325410]  ;;  %v250_v39 = vcombine.high %v246_v23, %v246_v23 }
  0xa1   : > { %v338_v28 = vcombine.high %v1051_v26, %v1051_v26  ;;  %v714_v29 = vld [vmem:[#allocation2] sm:$0x3f]  ;;  %409 = vrot.lane.b32.xlu1 %v400_v24, %s1216_s7  ;;  %v343_v32 = vand.u32 %v1051_v26, %v1318_v27  ;;  %v408_v37 = vcombine.high %v400_v24, %v400_v24  ;;  %v407_v38 = vrot.slane %v393_v36, %v1308_v11  ;;  %v1056_v36 = vld [vmem:[%s1453_s1 + $0x10] sm:$0xf] }
  0xa2   : > { %266 = vrot.lane.b32.xlu0 %v257_v25, %s1217_s8  ;;  %v491_v30 = vld [vmem:[#allocation2] sm:$0x3f]  ;;  %v727_v33 = vrot.slane %v714_v29, %v1308_v11  ;;  %v265_v40 = vcombine.high %v257_v25, %v257_v25  ;;  %v720_v41 = vcombine.high %v714_v29, %v714_v29  ;;  %v264_v42 = vrot.slane %v250_v39, %v1308_v11  ;;  %v1062_v25 = vld [vmem:[%s1453_s1 + $0x14] sm:$0xf] }
  0xa3   : > { %v346_v31 = vand.u32 %v338_v28, %v1318_v27  ;;  %v504_v34 = vrot.slane %v491_v30, %v1308_v11  ;;  %v497_v45 = vcombine.high %v491_v30, %v491_v30  ;;  %v631_v48 = vld [vmem:[#allocation2] sm:$0x3f] }
  0xa4   : > { %v734_v43 = vrot.slane %v720_v41, %v1308_v11  ;;  %v735_v44 = vcombine.high %v727_v33, %v727_v33  ;;  %v635_v49 = vcombine.high %v631_v48, %v631_v48  ;;  %v854_v50 = vld [vmem:[#allocation2] sm:$0x3f]  ;;  %v642_v51 = vrot.slane %v631_v48, %v1308_v11 }
  0xa5   : > { %348 = vmatprep.subr.bf16.mxu0 %v346_v31  ;;  %736 = vrot.lane.b32.xlu1 %v727_v33, %s1218_s9  ;;  %v511_v46 = vrot.slane %v497_v45, %v1308_v11  ;;  %v512_v47 = vcombine.high %v504_v34, %v504_v34  ;;  %v865_v53 = vrot.slane %v854_v50, %v1308_v11 }
  0xa6   : > { %349 = vmatpush1.bf16.msra.mxu0 %v343_v32  ;;  %513 = vrot.lane.b32.xlu0 %v504_v34, %s1219_s12  ;;  %v649_v52 = vrot.slane %v635_v49, %v1308_v11  ;;  %v650_v54 = vcombine.high %v642_v51, %v642_v51  ;;  %v858_v55 = vcombine.high %v854_v50, %v854_v50 }
  0xa7   : > { %v873_v56 = vcombine.high %v865_v53, %v865_v53 }
  0xa8   : > { %v872_v57 = vrot.slane %v858_v55, %v1308_v11 }
  0xa9   : > { %1052 = vmatmul.mubr.msk.bf16.vlgmr.msra.gmra.mrb[0].mxu0 %vm275_vm2, %v245_v35  ;;  %795 = vrot.lane.b32.xlu1 %v727_v33, %s1220_s13 }
  0xaa   : > { %459 = vmatprep.mubr.bf16.mxu0 %v1214_v19  ;;  %411 = vrot.lane.b32.xlu0 %v408_v37, %s1216_s7 }
  0xad   : > { %413 = vrot.lane.b32.xlu1 %v407_v38, %s1216_s7  ;;  %s982_s7 = sshll.u32 %s190_s6, 4  ;;  %s1410_s7 = int_to_ptr.vmem [resolvable:$true] %s982_s7 }
  0xae   : > { %268 = vrot.lane.b32.xlu0 %v265_v40, %s1217_s8  ;;  %s1148_s19 = scalar_lea.vmem %s1410_s7, 256 }
  0xaf   : > { %p1149_p11 = scmp.ne.s32.totalorder %s1410_s7, %s1148_s19 }
  0xb1   : > { %270 = vrot.lane.b32.xlu1 %v264_v42, %s1217_s8  ;;  %p1150_p12 = pnand %p1149_p11, %p1288_p5 }
  0xb2   : > { %740 = vrot.lane.b32.xlu0 %v734_v43, %s1218_s9 }
  0xb3   : > { %p1151_p13 = pneg %p1150_p12 }
  0xb5   : > { %738 = vrot.lane.b32.xlu1 %v735_v44, %s1218_s9 }
  0xb6   : > { %572 = vrot.lane.b32.xlu0 %v504_v34, %s1221_s14 }
  0xb9   : > { %517 = vrot.lane.b32.xlu1 %v511_v46, %s1219_s12 }
  0xba   : > { %515 = vrot.lane.b32.xlu0 %v512_v47, %s1219_s12  ;;  %s1224_s12 = smov [#allocation3]  }
  0xbd   : > { %797 = vrot.lane.b32.xlu1 %v735_v44, %s1220_s13 }
  0xbe   : > { %799 = vrot.lane.b32.xlu0 %v734_v43, %s1220_s13  ;;  %s1152_s13 = sshll.u32 %s1224_s12, 4  ;;  %s1153_s13 = int_to_ptr.vmem [resolvable:$false] %s1152_s13 }
  0xbf   : > { %p1155_p0 = scmp.lt.s32.totalorder %s1410_s7, %s1153_s13 }
  0xc1   : > { %576 = vrot.lane.b32.xlu1 %v511_v46, %s1221_s14  ;;  %v1061_v46 = vld [vmem:[%s1453_s1 + $0x8] sm:$0xf] }
  0xc2   : > { %574 = vrot.lane.b32.xlu0 %v512_v47, %s1221_s14  ;;  %v1055_v47 = vld [vmem:[%s1453_s1 + $0x4] sm:$0xf]  ;;  %s1154_s14 = scalar_lea.vmem %s1153_s13, 512 }
  0xc3   : > { %p1156_p1 = scmp.lt.s32.totalorder %s1154_s14, %s1148_s19 }
  0xc5   : > { %651 = vrot.lane.b32.xlu1 %v642_v51, %s1222_s20  ;;  %p1157_p2 = por %p1156_p1, %p1155_p0 }
  0xc6   : > { %655 = vrot.lane.b32.xlu0 %v649_v52, %s1222_s20 }
  0xc7   : > { %p1158_p3 = pnand %p1157_p2, %p1151_p13 }
  0xc9   : > { %653 = vrot.lane.b32.xlu1 %v650_v54, %s1222_s20 }
  0xca   : > { %876 = vrot.lane.b32.xlu0 %v873_v56, %s1223_s22 }
  0xcd   : > { %878 = vrot.lane.b32.xlu1 %v872_v57, %s1223_s22 }
  0xce   : > { %874 = vrot.lane.b32.xlu0 %v865_v53, %s1223_s22 }
  0xd1   : > { %960 = vperm.xlu1 %1139, %v957_v58  }
 0x113   : > { %v410_v59 = vpop.permute.xlu1 %409 }
 0x114   : > { %v267_v60 = vpop.permute.xlu0 %266 }
 0x117   : > { %v737_v61 = vpop.permute.xlu1 %736 }
 0x118   : > { %v514_v62 = vpop.permute.xlu0 %513 }
 0x11b   : > { %v796_v63 = vpop.permute.xlu1 %795 }
 0x11c   : > { %v412_v0 = vpop.permute.xlu0 %411 }
 0x11d   : > { %v416_v1 = vsel %vm415_vm3, %v410_v59, %v412_v0  ;;  %v1059_v59 = vld [vmem:[%s1453_s1 + $0x1c] sm:$0xf] }
 0x11e   : > { %v422_v7 = vand.u32 %v416_v1, %v1318_v27 }
 0x11f   : > { %v414_v2 = vpop.permute.xlu1 %413 }
 0x120   : > { %v417_v3 = vsel %vm415_vm3, %v412_v0, %v414_v2  ;;  %v269_v4 = vpop.permute.xlu0 %268 }
 0x121   : > { %v425_v5 = vand.u32 %v417_v3, %v1318_v27  ;;  %v273_v8 = vsel %vm272_vm4, %v267_v60, %v269_v4 }
 0x122   : > { %v284_v14 = vand.u32 %v1318_v27, %v273_v8 }
 0x123   : > { %v271_v9 = vpop.permute.xlu1 %270  ;;  %427 = vmatprep.subr.bf16.mxu0 %v425_v5 }
 0x124   : > { %v741_v10 = vpop.permute.xlu0 %740  ;;  %428 = vmatpush1.bf16.msra.mxu0 %v422_v7  ;;  %v274_v11 = vsel %vm272_vm4, %v269_v4, %v271_v9 }
 0x125   : > { %v287_v13 = vand.u32 %v1318_v27, %v274_v11  ;;  %v473_v11 = vsub.s32 0, %v1301_v6 }
 0x127   : > { %289 = vmatprep.subr.bf16.mxu1 %v287_v13  ;;  %v739_v15 = vpop.permute.xlu1 %738  ;;  %1054 = vmatmul.mubr.msk.bf16.vlgmr.msra.gmra.mrb[0].mxu0 %vm275_vm2, %v1053_v12  ;;  %v243_v12 = vld [vmem:[%s1455_s3] sm:$0xf]  ;;  %v477_v13 = vsub.s32 2, %v1301_v6 }
 0x128   : > { %v573_v16 = vpop.permute.xlu0 %572  ;;  %v743_v17 = vsel %vm742_vm5, %v737_v61, %v739_v15  ;;  %v744_v18 = vsel %vm742_vm5, %v739_v15, %v741_v10  ;;  %290 = vmatpush1.bf16.msra.mxu1 %v284_v14  ;;  %786 = vmatprep.mubr.bf16.mxu0 %v1214_v19  ;;  %v937_v15 = vsub.s32 1, %v1301_v6 }
 0x129   : > { %v749_v21 = vand.u32 %v743_v17, %v1318_v27  ;;  %v752_v22 = vand.u32 %v744_v18, %v1318_v27 }
 0x12b   : > { %1050 = vmatmul.mubr.msk.bf16.vlgmr.msra.gmra.mrb[0].mxu1 %vm275_vm2, %v1049_v20  ;;  %v518_v23 = vpop.permute.xlu1 %517  ;;  %754 = vmatprep.subr.bf16.mxu0 %v752_v22  ;;  %v941_v20 = vsub.s32 3, %v1301_v6 }
 0x12c   : > { %v516_v24 = vpop.permute.xlu0 %515  ;;  %755 = vmatpush1.bf16.msra.mxu0 %v749_v21  ;;  %563 = vmatprep.mubr.bf16.mxu1 %v1214_v19  ;;  %v478_v21 = vrot.slane %v243_v12, %v477_v13 }
 0x12d   : > { %v520_v26 = vsel %vm519_vm6, %v514_v62, %v516_v24  ;;  %v521_v28 = vsel %vm519_vm6, %v516_v24, %v518_v23 }
 0x12e   : > { %v526_v29 = vand.u32 %v520_v26, %v1318_v27  ;;  %v529_v30 = vand.u32 %v521_v28, %v1318_v27  ;;  %v942_v28 = vrot.slane %v243_v12, %v941_v20 }
 0x12f   : > { %v798_v31 = vpop.permute.xlu1 %797  ;;  %1063 = vmatmul.mubr.msk.bf16.vlgmr.msra.gmra.mrb[4].mxu0 %vm275_vm2, %v1062_v25  ;;  %v938_v25 = vrot.slane %v243_v12, %v937_v15 }
 0x130   : > { %v800_v32 = vpop.permute.xlu0 %799  ;;  %531 = vmatprep.subr.bf16.mxu1 %v529_v30  ;;  %v802_v33 = vsel %vm801_vm7, %v796_v63, %v798_v31  ;;  %845 = vmatprep.mubr.bf16.mxu0 %v1214_v19 }
 0x131   : > { %v803_v34 = vsel %vm801_vm7, %v798_v31, %v800_v32  ;;  %v808_v35 = vand.u32 %v802_v33, %v1318_v27  ;;  %532 = vmatpush1.bf16.msra.mxu1 %v526_v29  ;;  %v488_v29 = vrot.slane %v478_v21, %v473_v11  ;;  %v948_v31 = vrot.slane %v938_v25, %v937_v15 }
 0x132   : > { %v811_v37 = vand.u32 %v803_v34, %v1318_v27 }
 0x133   : > { %v577_v38 = vpop.permute.xlu1 %576 }
 0x134   : > { %v575_v39 = vpop.permute.xlu0 %574  ;;  %1057 = vmatmul.mubr.msk.bf16.vlgmr.msra.gmra.mrb[4].mxu1 %vm275_vm2, %v1056_v36  ;;  %813 = vmatprep.subr.bf16.mxu0 %v811_v37 }
 0x135   : > { %v579_v40 = vsel %vm578_vm8, %v573_v16, %v575_v39  ;;  %v580_v41 = vsel %vm578_vm8, %v575_v39, %v577_v38  ;;  %814 = vmatpush1.bf16.msra.mxu0 %v808_v35  ;;  %622 = vmatprep.mubr.bf16.mxu1 %v1214_v19  ;;  %v474_v16 = vrot.slane %v243_v12, %v473_v11 }
 0x136   : > { %v585_v42 = vand.u32 %v579_v40, %v1318_v27  ;;  %v588_v43 = vand.u32 %v580_v41, %v1318_v27  ;;  %v952_v35 = vrot.slane %v942_v28, %v937_v15 }
 0x137   : > { %v652_v44 = vpop.permute.xlu1 %651  ;;  %v484_v26 = vrot.slane %v474_v16, %v473_v11 }
 0x138   : > { %v656_v45 = vpop.permute.xlu0 %655  ;;  %590 = vmatprep.subr.bf16.mxu1 %v588_v43 }
 0x139   : > { %591 = vmatpush1.bf16.msra.mxu1 %v585_v42 }
 0x13b   : > { %v654_v48 = vpop.permute.xlu1 %653  ;;  %1064 = vmatmul.mubr.msk.bf16.vlgmr.msra.gmra.mrb[4].mxu0 %vm275_vm2, %v1061_v46 }
 0x13c   : > { %v877_v49 = vpop.permute.xlu0 %876  ;;  %1058 = vmatmul.mubr.msk.bf16.vlgmr.msra.gmra.mrb[8].mxu1 %vm275_vm2, %v1055_v47  ;;  %v658_v50 = vsel %vm657_vm9, %v652_v44, %v654_v48  ;;  %v659_v51 = vsel %vm657_vm9, %v654_v48, %v656_v45  ;;  %924 = vmatprep.mubr.bf16.mxu0 %v1214_v19 }
 0x13d   : > { %v664_v52 = vand.u32 %v658_v50, %v1318_v27  ;;  %v667_v53 = vand.u32 %v659_v51, %v1318_v27  ;;  %701 = vmatprep.mubr.bf16.mxu1 %v1214_v19  ;;  %v1065_v19 = vld [vmem:[%s1453_s1 + $0x20] sm:$0xf] }
 0x13f   : > { %669 = vmatprep.subr.bf16.mxu1 %v667_v53  ;;  %v879_v54 = vpop.permute.xlu1 %878 }
 0x140   : > { %v875_v55 = vpop.permute.xlu0 %874  ;;  %v882_v56 = vsel %vm880_vm10, %v877_v49, %v879_v54  ;;  %670 = vmatpush1.bf16.msra.mxu1 %v664_v52 }
 0x141   : > { %v881_v57 = vsel %vm880_vm10, %v875_v55, %v877_v49  ;;  %v890_v58 = vand.u32 %v882_v56, %v1318_v27 }
 0x142   : > { %v887_v60 = vand.u32 %v881_v57, %v1318_v27 }
 0x143   : > { %892 = vmatprep.subr.bf16.mxu0 %v890_v58 }
 0x144   : > { %1060 = vmatmul.mubr.msk.bf16.vlgmr.msra.gmra.mrb[12].mxu1 %vm275_vm2, %v1059_v59  ;;  %893 = vmatpush1.bf16.msra.mxu0 %v887_v60 }
 0x147   : > { %1066 = vmatmul.mubr.msk.bf16.vlgmr.msra.gmra.mrb[4].mxu0 %vm275_vm2, %v1065_v19 }
 0x150   : > { %v961_v46 = vpop.permute.xlu1 %960 }
 0x1fa   : > { %v461_v61 = vpop.f32.mrb[0].mxu0 }
 0x1fb   : > { %v463_v62 = vpop.f32.mrb[1].mxu0 }
 0x1fc   : > { %v465_v63 = vpop.f32.mrb[2].mxu0 }
 0x1fd   : > { %v466_v0 = vpop.f32.mrb[3].mxu0 }
 0x1fe   : > { %v323_v1 = vpop.f32.mrb[0].mxu1 }
 0x1ff   : > { %v1074_v2 = vadd.f32 %v461_v61, %v323_v1  ;;  %v325_v3 = vpop.f32.mrb[1].mxu1 }
 0x200   : > { %v1075_v4 = vadd.f32 %v463_v62, %v325_v3  ;;  %v327_v5 = vpop.f32.mrb[2].mxu1 }
 0x201   : > { %v328_v27 = vpop.f32.mrb[3].mxu1  ;;  %v489_v32 = vmul.f32 %v1074_v2, %v484_v26 }
 0x202   : > { %v490_v36 = vmul.f32 %v1075_v4, %v488_v29 }
 0x207   : > { %v565_v7 = vpop.f32.mrb[4].mxu1 }
 0x208   : > { %v567_v8 = vpop.f32.mrb[5].mxu1 }
 0x209   : > { %v569_v9 = vpop.f32.mrb[6].mxu1 }
 0x20a   : > { %v570_v10 = vpop.f32.mrb[7].mxu1 }
 0x20f   : > { %v624_v14 = vpop.f32.mrb[8].mxu1 }
 0x210   : > { %v625_v17 = vadd.f32 %v624_v14, %v565_v7  ;;  %v626_v18 = vpop.f32.mrb[9].mxu1 }
 0x211   : > { %v627_v22 = vadd.f32 %v626_v18, %v567_v8  ;;  %v628_v23 = vpop.f32.mrb[10].mxu1 }
 0x212   : > { %v629_v24 = vpop.f32.mrb[11].mxu1 }
 0x217   : > { %v703_v30 = vpop.f32.mrb[12].mxu1 }
 0x218   : > { %v710_v33 = vadd.f32 %v703_v30, %v625_v17  ;;  %v705_v34 = vpop.f32.mrb[13].mxu1 }
 0x219   : > { %v711_v6 = vadd.f32 %v705_v34, %v627_v22  ;;  %v707_v37 = vpop.f32.mrb[14].mxu1 }
 0x21a   : > { %v712_v38 = vadd.f32 %v710_v33, %v489_v32  ;;  %v926_v39 = vpop.f32.mrb[4].mxu0  ;;  %v708_v40 = vpop.f32.mrb[15].mxu1 }
 0x21b   : > { %v713_v41 = vadd.f32 %v711_v6, %v490_v36  ;;  %v953_v42 = vmul.f32 %v948_v31, %v926_v39  ;;  %v928_v43 = vpop.f32.mrb[5].mxu0 }
 0x21c   : > { %v954_v44 = vmul.f32 %v952_v35, %v928_v43  ;;  %v930_v45 = vpop.f32.mrb[6].mxu0 }
 0x21d   : > { %v931_v47 = vpop.f32.mrb[7].mxu0  ;;  %v955_v48 = vadd.f32 %v953_v42, %v712_v38 }
 0x21e   : > { %v956_v49 = vadd.f32 %v954_v44, %v713_v41 }
 0x21f   : > { %v963_v50 = vadd.f32 %v961_v46, %v955_v48 }
 0x220   : > { %v964_v51 = vadd.f32 %v961_v46, %v956_v49 }
 0x221   : > { %965 = vst [vmem:[%s190_s6] sm:$0xff] %v963_v50 }
 0x222   : > { %966 = vst [vmem:[%s190_s6 + $0x8] sm:$0xff] %v964_v51 }
 0x223   : > { %1161 = shalt.err (!%p1158_p3)
}
 0x224   : > { %s1162_s20 = scalar_lea.hbm %s1408_s10, 256  ;;  %s1166_s27 = scalar_lea.hbm %s1456_s4, 512 }
 0x225   : > { %p1163_p4 = scmp.ne.s32.totalorder %s1408_s10, %s1162_s20  ;;  %p1167_p9 = scmp.lt.u32.totalorder %s1408_s10, %s1456_s4 }
 0x226   : > { %p1168_p10 = scmp.lt.u32.totalorder %s1166_s27, %s1162_s20  ;;  %p1170_p12 = scmp.lt.u32.totalorder %s1162_s20, %s1408_s10 }
 0x227   : > { %p1164_p7 = pnand %p1163_p4, %p1288_p5 }
 0x228   : > { %p1169_p11 = por %p1168_p10, %p1167_p9 }
 0x229   : > { %p1165_p8 = pneg %p1164_p7 }
 0x22a   : > { %p1171_p13 = por %p1170_p12, %p1169_p11 }
 0x22c   : > { %p1172_p0 = pnand %p1171_p13, %p1165_p8 }
 0x22e   : > { %1175 = shalt.err (!%p1172_p0)
}
 0x22f   : > { %1088 = dma.vmem_to_hbm [thread:$0]  (%p1288_p5), %s1410_s7, 256, %s1408_s10, %s968_s11  }
 0x230 PF: > { %p1094_p1 = scmp.ge.s32.totalorder %s1210_s18, 2  ;;  %s994_s30 = sand.u32 1, %s1198_s15  }
 0x231   : > { %s995_s5 = scalar_lea.sflag [#allocation4], %s994_s30 }
 0x232   : > { %p1091_p2 = pnand %p1094_p1, %p1292_p6 }
 0x234   : > { %1193 = dma.done.wait (!%p1091_p2), %s995_s5, 256  }
 0x235   : > { %1195 = vsyncadd (!%p1091_p2), %s995_s5, 4294967040  ;;  %p14_p3 = scmp.ge.s32.totalorder %s1275_s21, 4   ;;  %s1459_s15 = smov %s1202_s16 }
 0x236   : > { %s1460_s16 = smov %s1206_s17  ;;  %s1461_s17 = smov %s1286_s24 }
 0x237   : > { %s1462_s18 = smov %s1275_s21  ;;  %16 = sbr.rel (!%p14_p3) target bundleno = 3 (0x3), region = 79 }
 0x23e   :  { %1000 = vsyncpa [#allocation4], 1 }
 0x23f   :  { %1002 = vsyncpa [#allocation4 + $0x1], 1 }

</bundles_post_ra>
